<compile_context>
chip_gen: v5e
topology: v5e:2x2
jax: 0.10.0
libtpu: 0.0.40
codegen_flags: <defaults>
</compile_context>

<pallas_src>
import re
import numpy as np
import jax
import jax.numpy as jnp
from jax import lax
from jax.experimental import pallas as pl
from jax.experimental.pallas import tpu as pltpu


# ----------------------------------------------------------------------------
# Host-side text machinery (pure Python, copied verbatim from the module).
# ----------------------------------------------------------------------------
SPECIAL_TOKEN_PATTERN = '<\\|.*?\\|>'

CHAR_TYPE_RANGE_MAP = [(39, 39, 'en_alphabet'), (48, 57, 'en_digit'), (65, 90, 'en_alphabet'),
                       (97, 122, 'en_alphabet'), (256, 383, 'latin_alphabet'), (384, 591, 'latin_alphabet'),
                       (880, 1023, 'greek'), (1024, 1279, 'cyrillic'), (1328, 1423, 'armenian'),
                       (1424, 1535, 'hebrew'), (1536, 1791, 'arabic'), (1792, 1871, 'syriac'),
                       (1872, 1919, 'arabic'), (1920, 1983, 'thaana'), (2304, 2431, 'devanagari'),
                       (2432, 2559, 'bengali'), (2560, 2687, 'gurmukhi'), (2688, 2815, 'gujarati'),
                       (2816, 2943, 'oriya'), (2944, 3071, 'tamil'), (3072, 3199, 'telugu'),
                       (3200, 3327, 'kannada'), (3328, 3455, 'malayalam'), (3456, 3583, 'sinhala'),
                       (3584, 3711, 'thai'), (3712, 3839, 'lao'), (3840, 4095, 'tibetan'),
                       (4096, 4255, 'myanmar'), (4256, 4351, 'georgian'), (4352, 4607, 'korean'),
                       (4608, 4991, 'ethiopic'), (5024, 5119, 'cherokee'), (6016, 6143, 'khmer'),
                       (6144, 6319, 'mongolian'), (11904, 12031, 'chinese'), (12032, 12255, 'chinese'),
                       (12288, 12351, 'japanese'), (12352, 12447, 'japanese'), (12448, 12543, 'japanese'),
                       (12544, 12591, 'chinese'), (12592, 12687, 'korean'), (12736, 12783, 'japanese'),
                       (12784, 12799, 'korean'), (13312, 19903, 'chinese'), (19968, 40959, 'chinese'),
                       (43360, 43391, 'korean'), (44032, 55203, 'korean'), (55216, 55295, 'korean'),
                       (63744, 64255, 'chinese'), (64336, 65023, 'arabic'), (65136, 65279, 'arabic'),
                       (65072, 65103, 'chinese'), (131072, 173791, 'chinese')]

SEP_CHARACTERS = ['，', '。', '？', '：', '！', '；', ',', '.', ':', ';', ' ', '?', '!', '、', '/', '\\', '\r', '\n']
SPACE_CHARACTERS = [' ', '\u3000', '\t']


def _get_char_type(ch: str) -> str:
    if ch in SPACE_CHARACTERS:
        return 'space'
    if ch in SEP_CHARACTERS:
        return 'sep'
    cp = ord(ch)
    for start, end, char_type in CHAR_TYPE_RANGE_MAP:
        if start <= cp <= end:
            return char_type
    return 'ignore'


def _split_sentence(sentence, special_tokens, sep_token='<|ss_sep|>'):
    sub_sentences = []
    tokens_with_positions = [(m.group(), m.start()) for m in re.finditer(SPECIAL_TOKEN_PATTERN, sentence)]
    special_token_tags = [None] * len(sentence)
    for token, pos in tokens_with_positions:
        token = token.lower()
        if token in special_tokens:
            special_token_tags[pos] = (token, 'special_tokens', len(token))
        else:
            raise ValueError("Unknown special token: '{}'".format(token))
    current_substr = ''
    current_substr_type = 'unknown'
    current_pos = 0
    while current_pos < len(sentence):
        if special_token_tags[current_pos] is not None:
            token, s_type, token_len = special_token_tags[current_pos]
            if current_substr != '':
                sub_sentences.append((current_substr.strip(), current_substr_type))
            current_substr = ''
            if token == sep_token:
                sub_sentences.append((token, 'sep'))
            else:
                sub_sentences.append((token, 'special_tokens'))
            current_pos += token_len
        else:
            ch = sentence[current_pos]
            ch_type = _get_char_type(ch)
            if ch_type == 'en_digit' or ch_type == 'ignore':
                pass
            elif ch_type == 'space':
                if current_substr != '' and current_substr_type in ['english', 'unknown_lang']:
                    current_substr += ch
            elif current_substr != '' and current_substr_type in ['chinese', 'japanese', 'korean']:
                sub_sentences.append((current_substr.strip(), current_substr_type))
                current_substr = ''
            elif ch_type == 'en_alphabet':
                if current_substr == '' or current_substr_type == 'english':
                    current_substr += ch
                else:
                    sub_sentences.append((current_substr.strip(), current_substr_type))
                    current_substr = ch
                current_substr_type = 'english'
            elif ch_type == 'latin_alphabet':
                if current_substr == '' or current_substr_type == 'unknown_latin_lang':
                    current_substr += ch
                else:
                    sub_sentences.append((current_substr.strip(), current_substr_type))
                    current_substr = ch
                current_substr_type = 'unknown_latin_lang'
            elif ch_type == 'chinese':
                if current_substr == '' or current_substr_type == 'chinese':
                    current_substr += ch
                else:
                    sub_sentences.append((current_substr.strip(), current_substr_type))
                    current_substr = ch
                current_substr_type = 'chinese'
            elif ch_type == 'japanese':
                if current_substr == '' or current_substr_type == 'japanese':
                    current_substr += ch
                else:
                    sub_sentences.append((current_substr.strip(), current_substr_type))
                    current_substr = ch
                current_substr_type = 'japanese'
            elif ch_type == 'korean':
                if current_substr == '' or current_substr_type == 'korean':
                    current_substr += ch
                else:
                    sub_sentences.append((current_substr.strip(), current_substr_type))
                    current_substr = ch
                current_substr_type = 'korean'
            elif ch_type == 'mongolian':
                if current_substr == '' or current_substr_type == 'mongolian':
                    current_substr += ch
                else:
                    sub_sentences.append((current_substr.strip(), current_substr_type))
                    current_substr = ch
                current_substr_type = 'mongolian'
            elif ch_type == 'sep':
                if current_substr != '' and current_substr_type != 'sep':
                    sub_sentences.append((current_substr.strip(), current_substr_type))
                current_substr = sep_token
                current_substr_type = 'sep'
            else:
                if current_substr == '' or current_substr_type == 'unknown_lang':
                    current_substr += ch
                else:
                    sub_sentences.append((current_substr.strip(), current_substr_type))
                    current_substr = ch
                current_substr_type = 'unknown_lang'
            current_pos += 1
    if current_substr != '':
        sub_sentences.append((current_substr.strip(), current_substr_type))
    return sub_sentences


# TODO(synk): the real G2p / G2pM models, the BPE PhonemeTokenizer and the
# pinyin2phoneme.txt dictionary are external host-side assets with no Pallas
# equivalent; deterministic in-script stand-ins are used instead.
_CHAR2PINYIN = {'你': 'ni', '好': 'hao', '世': 'shi', '界': 'jie', '的': 'de'}
_PINYIN2PHONEME = {'ni': ['n', 'i3'], 'hao': ['h', 'ao3'], 'shi': ['sh', 'i4'],
                   'jie': ['j', 'ie4'], 'de': ['d', 'e5']}


class _SyntheticG2pEn:
    def __call__(self, text):
        return [c for c in text.upper() if c.isalpha()]


class _SyntheticG2pZh:
    def __call__(self, text, tone=False):
        return [_CHAR2PINYIN[c] for c in text if c in _CHAR2PINYIN]


class _SyntheticPhonemeTokenizer:
    def __init__(self):
        self.pad_id = 0
        self._vocab = {}          # deterministic: ids assigned in encounter order

    def encode(self, phonemes: str):
        ids = []
        for tok in phonemes.split():
            if tok not in self._vocab:
                self._vocab[tok] = len(self._vocab) + 1     # 0 reserved for pad
            ids.append(self._vocab[tok])
        return ids


# ----------------------------------------------------------------------------
# Pallas kernel: row-aligned token buffer -> pad_id-masked (B_pad, L_pad) matrix.
#   rows_ref : VMEM (ROW_BLOCK, L_pad) int32  -- row b's tokens in [0, len[b])
#   len_ref  : SMEM (B_pad,) int32            -- scalar-prefetched row lengths
#   pad_ref  : SMEM (1,) int32                -- scalar-prefetched pad_id
# out[b, j] = rows[b, j] if j < len[b] else pad_id   (pure masked copy)
# ----------------------------------------------------------------------------
ROW_BLOCK = 8           # sublane-aligned row tile


def _pad_pack_kernel(len_ref, pad_ref, rows_ref, out_ref):
    rb, L = out_ref.shape
    row0 = pl.program_id(0) * rb
    col = lax.broadcasted_iota(jnp.int32, (rb, L), 1)
    row = lax.broadcasted_iota(jnp.int32, (rb, L), 0)
    # Broadcast each row's length (scalar read from SMEM) across its row.
    lens = jnp.zeros((rb, L), jnp.int32)
    for r in range(rb):                                   # static unroll, rb == 8
        lens = jnp.where(row == r, len_ref[row0 + r], lens)
    pad = pad_ref[0]
    out_ref[...] = jnp.where(col < lens, rows_ref[...], pad)


def pallas_pad_pack(rows, lengths, pad_id):
    """rows: (B_pad, L_pad) int32, B_pad % ROW_BLOCK == 0, L_pad % 128 == 0."""
    B_pad, L_pad = rows.shape
    assert B_pad % ROW_BLOCK == 0 and L_pad % 128 == 0
    lens = jnp.asarray(lengths, jnp.int32).reshape(B_pad)
    pad = jnp.full((1,), int(pad_id), dtype=jnp.int32)
    rows = jnp.asarray(rows, jnp.int32)

    return pl.pallas_call(
        _pad_pack_kernel,
        out_shape=jax.ShapeDtypeStruct((B_pad, L_pad), jnp.int32),
        grid_spec=pltpu.PrefetchScalarGridSpec(
            num_scalar_prefetch=2,                 # lens, pad -> SMEM
            grid=(B_pad // ROW_BLOCK,),
            in_specs=[pl.BlockSpec((ROW_BLOCK, L_pad), lambda i, lens, pad: (i, 0))],
            out_specs=pl.BlockSpec((ROW_BLOCK, L_pad), lambda i, lens, pad: (i, 0)),
        ),
        compiler_params=pltpu.CompilerParams(
            dimension_semantics=("parallel",)),    # shard rows across v7x TCs
    )(lens, pad, rows)


def _bucket_len(n: int) -> int:
    """Lane-dense, compile-cache-friendly bucket: power of two, >= 128."""
    return max(128, int(pl.next_power_of_2(max(int(n), 1))))


def _bucket_rows(b: int) -> int:
    return ((max(int(b), 1) + ROW_BLOCK - 1) // ROW_BLOCK) * ROW_BLOCK


# ----------------------------------------------------------------------------
# The translator module (forward uses the Pallas kernel for the tensor part).
# ----------------------------------------------------------------------------
class Lyrics2PhonemeTranslator:
    def __init__(self, hparams: dict):
        self.hparams = hparams
        self.phoneme_tokenizer = _SyntheticPhonemeTokenizer()
        self.pinyin2phoneme_dict = dict(_PINYIN2PHONEME)
        self.special_tokens = {'<|ss_sep|>', '<|start|>', '<|end|>'}
        self.g2p_zh_model = _SyntheticG2pZh()
        self.g2p_model = _SyntheticG2pEn()

    def split_sentence(self, sentence):
        return _split_sentence(sentence, self.special_tokens)

    def split_and_translate_sentence(self, sentence):
        sub_sentences = self.split_sentence(sentence)
        output = []
        for sub_sentence_text, sub_sentence_type in sub_sentences:
            if sub_sentence_type in ('special_tokens', 'sep'):
                output.append({'text': sub_sentence_text, 'type': sub_sentence_type,
                               'phonemes': sub_sentence_text})
            elif sub_sentence_type == 'english':
                phonemes = self.g2p_model(sub_sentence_text)
                phonemes = ' '.join(p.strip().upper() for p in phonemes)
                output.append({'text': sub_sentence_text, 'type': sub_sentence_type,
                               'phonemes': phonemes})
            elif sub_sentence_type == 'chinese':
                pinyin = self.g2p_zh_model(sub_sentence_text, tone=False)
                phonemes = self._convert_pinyin_to_phoneme(pinyin)
                output.append({'text': sub_sentence_text, 'type': sub_sentence_type,
                               'phonemes': phonemes})
            else:
                raise ValueError('Unknown sentence type: {}'.format(sub_sentence_type))
        return output

    def _convert_pinyin_to_phoneme(self, pinyin):
        phonemes = []
        for p in pinyin:
            if p in self.pinyin2phoneme_dict:
                phonemes.append(' '.join(self.pinyin2phoneme_dict[p]))
            else:
                raise ValueError('Unknown pinyin: {}'.format(p))
        return ' '.join(phonemes)

    def forward(self, lyrics, pad_id: int = -1):
        if pad_id < 0:
            pad_id = self.phoneme_tokenizer.pad_id
        num_batches = len(lyrics)
        phoneme_tokens = []
        for i in range(num_batches):
            parts = self.split_and_translate_sentence(lyrics[i])
            toks = []
            for s in parts:
                toks.extend(self.phoneme_tokenizer.encode(s['phonemes']))
            phoneme_tokens.append(toks)
        max_token_len = max(len(t) for t in phoneme_tokens)

        # Bucketed, lane-dense shapes (compile-cache friendly across calls).
        B_pad = _bucket_rows(num_batches)
        L_pad = _bucket_len(max_token_len)

        # Host lays the ragged rows out row-aligned (mirrors the per-row
        # torch.tensor(...) construction in the reference); padding with pad_id
        # and the final pack happen on-device in the Pallas kernel.
        rows = np.zeros((B_pad, L_pad), dtype=np.int32)
        lengths = np.zeros((B_pad,), dtype=np.int32)
        for i, t in enumerate(phoneme_tokens):
            if len(t) > 0:
                rows[i, :len(t)] = np.asarray(t, dtype=np.int32)
            lengths[i] = len(t)

        packed = pallas_pad_pack(rows, lengths, pad_id)
        result = packed[:num_batches, :max_token_len]
        return result, phoneme_tokens, pad_id


if __name__ == "__main__":
    # Deterministic example inputs (PRNGKey(0) used to pick the batch ordering).
    key = jax.random.PRNGKey(0)
    flip = int(jax.random.randint(key, (), 0, 2))
    base_lyrics = ["hello world, how are you",
                   "<|ss_sep|> 你好 世界 goodbye"]
    lyrics = base_lyrics if flip == 0 else base_lyrics[::-1]

    translator = Lyrics2PhonemeTranslator({'ama-prof-divi': {'device': 'tpu'}})
    result, phoneme_tokens, pad_id = translator.forward(lyrics)
    result = jax.block_until_ready(result)

    # Pure-numpy reference of the padded token matrix (mirrors torch.full + row fill).
    B = len(phoneme_tokens)
    L = max(len(t) for t in phoneme_tokens)
    expected = np.full((B, L), pad_id, dtype=np.int32)
    for i, t in enumerate(phoneme_tokens):
        expected[i, :len(t)] = np.asarray(t, dtype=np.int32)

    assert result.shape == (B, L), (result.shape, (B, L))
    np.testing.assert_array_equal(np.asarray(result), expected)
    print("KERNEL_OK")
</pallas_src>

<mosaic_0001>
module attributes {stable_mosaic.version = 11 : i64} {
  func.func @_pad_pack_kernel(%arg0: i32, %arg1: memref<8xi32, #tpu.memory_space<smem>>, %arg2: memref<1xi32, #tpu.memory_space<smem>>, %arg3: memref<8x128xi32, #tpu.memory_space<vmem>>, %arg4: memref<8x128xi32, #tpu.memory_space<vmem>>) attributes {dimension_semantics = [#tpu.dimension_semantics<parallel>], iteration_bounds = array<i64: 1>, scalar_prefetch = 2 : i64, scratch_operands = 0 : i64, tpu.core_type = #tpu.core_type<tc>, window_params = [{transform_indices = @transform_0, window_bounds = array<i64: 8, 128>}, {transform_indices = @transform_1, window_bounds = array<i64: 8, 128>}]} {
    %c8_i32 = arith.constant 8 : i32
    %0 = arith.muli %arg0, %c8_i32 : i32
    %1 = tpu.iota {dimensions = array<i32: 1>} : vector<8x128xi32>
    %2 = tpu.iota {dimensions = array<i32: 0>} : vector<8x128xi32>
    %c0_i32 = arith.constant 0 : i32
    %3 = vector.broadcast %c0_i32 : i32 to vector<8x128xi32>
    %c0_i32_0 = arith.constant 0 : i32
    %4 = vector.broadcast %c0_i32_0 : i32 to vector<8x128xi32>
    %5 = arith.cmpi eq, %2, %4 : vector<8x128xi32>
    %c0_i32_1 = arith.constant 0 : i32
    %6 = arith.addi %0, %c0_i32_1 : i32
    %7 = arith.index_cast %6 : i32 to index
    %8 = memref.load %arg1[%7] : memref<8xi32, #tpu.memory_space<smem>>
    %9 = vector.broadcast %8 : i32 to vector<8x128xi32>
    %10 = arith.select %5, %9, %3 : vector<8x128xi1>, vector<8x128xi32>
    %c1_i32 = arith.constant 1 : i32
    %11 = vector.broadcast %c1_i32 : i32 to vector<8x128xi32>
    %12 = arith.cmpi eq, %2, %11 : vector<8x128xi32>
    %c1_i32_2 = arith.constant 1 : i32
    %13 = arith.addi %0, %c1_i32_2 : i32
    %14 = arith.index_cast %13 : i32 to index
    %15 = memref.load %arg1[%14] : memref<8xi32, #tpu.memory_space<smem>>
    %16 = vector.broadcast %15 : i32 to vector<8x128xi32>
    %17 = arith.select %12, %16, %10 : vector<8x128xi1>, vector<8x128xi32>
    %c2_i32 = arith.constant 2 : i32
    %18 = vector.broadcast %c2_i32 : i32 to vector<8x128xi32>
    %19 = arith.cmpi eq, %2, %18 : vector<8x128xi32>
    %c2_i32_3 = arith.constant 2 : i32
    %20 = arith.addi %0, %c2_i32_3 : i32
    %21 = arith.index_cast %20 : i32 to index
    %22 = memref.load %arg1[%21] : memref<8xi32, #tpu.memory_space<smem>>
    %23 = vector.broadcast %22 : i32 to vector<8x128xi32>
    %24 = arith.select %19, %23, %17 : vector<8x128xi1>, vector<8x128xi32>
    %c3_i32 = arith.constant 3 : i32
    %25 = vector.broadcast %c3_i32 : i32 to vector<8x128xi32>
    %26 = arith.cmpi eq, %2, %25 : vector<8x128xi32>
    %c3_i32_4 = arith.constant 3 : i32
    %27 = arith.addi %0, %c3_i32_4 : i32
    %28 = arith.index_cast %27 : i32 to index
    %29 = memref.load %arg1[%28] : memref<8xi32, #tpu.memory_space<smem>>
    %30 = vector.broadcast %29 : i32 to vector<8x128xi32>
    %31 = arith.select %26, %30, %24 : vector<8x128xi1>, vector<8x128xi32>
    %c4_i32 = arith.constant 4 : i32
    %32 = vector.broadcast %c4_i32 : i32 to vector<8x128xi32>
    %33 = arith.cmpi eq, %2, %32 : vector<8x128xi32>
    %c4_i32_5 = arith.constant 4 : i32
    %34 = arith.addi %0, %c4_i32_5 : i32
    %35 = arith.index_cast %34 : i32 to index
    %36 = memref.load %arg1[%35] : memref<8xi32, #tpu.memory_space<smem>>
    %37 = vector.broadcast %36 : i32 to vector<8x128xi32>
    %38 = arith.select %33, %37, %31 : vector<8x128xi1>, vector<8x128xi32>
    %c5_i32 = arith.constant 5 : i32
    %39 = vector.broadcast %c5_i32 : i32 to vector<8x128xi32>
    %40 = arith.cmpi eq, %2, %39 : vector<8x128xi32>
    %c5_i32_6 = arith.constant 5 : i32
    %41 = arith.addi %0, %c5_i32_6 : i32
    %42 = arith.index_cast %41 : i32 to index
    %43 = memref.load %arg1[%42] : memref<8xi32, #tpu.memory_space<smem>>
    %44 = vector.broadcast %43 : i32 to vector<8x128xi32>
    %45 = arith.select %40, %44, %38 : vector<8x128xi1>, vector<8x128xi32>
    %c6_i32 = arith.constant 6 : i32
    %46 = vector.broadcast %c6_i32 : i32 to vector<8x128xi32>
    %47 = arith.cmpi eq, %2, %46 : vector<8x128xi32>
    %c6_i32_7 = arith.constant 6 : i32
    %48 = arith.addi %0, %c6_i32_7 : i32
    %49 = arith.index_cast %48 : i32 to index
    %50 = memref.load %arg1[%49] : memref<8xi32, #tpu.memory_space<smem>>
    %51 = vector.broadcast %50 : i32 to vector<8x128xi32>
    %52 = arith.select %47, %51, %45 : vector<8x128xi1>, vector<8x128xi32>
    %c7_i32 = arith.constant 7 : i32
    %53 = vector.broadcast %c7_i32 : i32 to vector<8x128xi32>
    %54 = arith.cmpi eq, %2, %53 : vector<8x128xi32>
    %c7_i32_8 = arith.constant 7 : i32
    %55 = arith.addi %0, %c7_i32_8 : i32
    %56 = arith.index_cast %55 : i32 to index
    %57 = memref.load %arg1[%56] : memref<8xi32, #tpu.memory_space<smem>>
    %58 = vector.broadcast %57 : i32 to vector<8x128xi32>
    %59 = arith.select %54, %58, %52 : vector<8x128xi1>, vector<8x128xi32>
    %c0 = arith.constant 0 : index
    %60 = memref.load %arg2[%c0] : memref<1xi32, #tpu.memory_space<smem>>
    %61 = arith.cmpi slt, %1, %59 : vector<8x128xi32>
    %c0_9 = arith.constant 0 : index
    %c0_10 = arith.constant 0 : index
    %62 = vector.load %arg3[%c0_9, %c0_10] : memref<8x128xi32, #tpu.memory_space<vmem>>, vector<8x128xi32>
    %63 = vector.broadcast %60 : i32 to vector<8x128xi32>
    %64 = arith.select %61, %62, %63 : vector<8x128xi1>, vector<8x128xi32>
    %c0_11 = arith.constant 0 : index
    %c0_12 = arith.constant 0 : index
    %65 = vector.load %arg4[%c0_11, %c0_12] : memref<8x128xi32, #tpu.memory_space<vmem>>, vector<8x128xi32>
    tpu.vector_store %arg4[%c0_11, %c0_12], %64 {strides = array<i32>} : memref<8x128xi32, #tpu.memory_space<vmem>>, vector<8x128xi32>,
    return
  }
  func.func @transform_0(%arg0: i32, %arg1: memref<8xi32, #tpu.memory_space<smem>>, %arg2: memref<1xi32, #tpu.memory_space<smem>>) -> (i32, i32) {
    %c0_i32 = arith.constant 0 : i32
    %c0_i32_0 = arith.constant 0 : i32
    return %arg0, %c0_i32 : i32, i32
  }
  func.func @transform_1(%arg0: i32, %arg1: memref<8xi32, #tpu.memory_space<smem>>, %arg2: memref<1xi32, #tpu.memory_space<smem>>) -> (i32, i32) {
    %c0_i32 = arith.constant 0 : i32
    %c0_i32_0 = arith.constant 0 : i32
    return %arg0, %c0_i32 : i32, i32
  }
}

</mosaic_0001>

<bundles_post_ra>
// kernel: tpu_custom_call.1
= control target key start
LH: loop header
LB: loop body
LE: loop exit
PB: predicated region body
PF: predicated region fallthrough
CT: control target
= control target key end

     0   :  { %s177_s15 = smov [#allocation3]   ;;  %s212_s0 = inlined_call_operand.vmem [shape: s32[8], index: 0, kind: input, shape index: {}]   ;;  %s213_s1 = inlined_call_operand.<no memory space> [shape: s32[1], index: 1, kind: input, shape index: {}]   ;;  %s214_s2 = inlined_call_operand.hbm [shape: s32[8,128], index: 2, kind: input, shape index: {}]   ;;  %s215_s3 = inlined_call_operand.hbm [shape: s32[8,128], index: 3, kind: output, shape index: {}]  }
   0x1   :  { %s9_s14 = sshll.u32 %s212_s0, 4  ;;  %s10_s14 = int_to_ptr.vmem [resolvable:$true] %s9_s14 }
   0x2   :  { %12 = dma.vmem_to_smem %s10_s14, 16, %s177_s15, [#allocation2] }
   0x3   :  { %171 = dma.done.wait [#allocation2], 16 }
   0x4   :  { %172 = vsyncadd [#allocation2], 4294967280 }
   0x5   :  { %16 = sfence }
   0x6   :  { %17 = vsyncpa [#allocation6], 0 }
   0x7   :  { %18 = vsyncpa [#allocation7], 0  ;;  %s24_s18 = sshll.u32 %s214_s2, 4  ;;  %s178_s19 = smov [#allocation5]   ;;  %s25_s18 = int_to_ptr.hbm [resolvable:$true] %s24_s18 }
   0x8   :  { %s26_s20 = sshll.u32 %s178_s19, 4  ;;  %s27_s20 = int_to_ptr.vmem [resolvable:$true] %s26_s20 }
   0x9   :  { %29 = dma.hbm_to_vmem [thread:$0]  %s25_s18, 128, %s27_s20, [#allocation6]  }
   0xa   :  { %173 = dma.done.wait [#allocation6], 128  }
   0xb   :  { %174 = vsyncadd [#allocation6], 4294967168  ;;  %v35_v0 = vlaneseq  ;;  %s40_s0 = sld [smem:[#allocation3]]  ;;  %s179_s27 = smov [#allocation8]   ;;  %v80_v18 = vld [vmem:[#allocation5] sm:$0xff]  ;;  %v81_v19 = vstv %s213_s1 }
   0xc   :  { %s101_s21 = sld [smem:[#allocation3 + $0x1]]  ;;  %s89_s28 = sshll.u32 %s179_s27, 4  ;;  %s90_s28 = int_to_ptr.vmem [resolvable:$true] %s89_s28 }
   0xd   :  { %v38_v1 = vshrl.u32 %v35_v0, 7  ;;  %s102_s22 = sld [smem:[#allocation3 + $0x2]]  ;;  %v36_v11 = vand.u32 127, %v35_v0  ;;  %s91_s4 = sshll.u32 %s215_s3, 4  ;;  %s92_s4 = int_to_ptr.hbm [resolvable:$true] %s91_s4 }
   0xe   :  { %s103_s23 = sld [smem:[#allocation3 + $0x3]] }
   0xf   :  { %vm39_vm0 = vcmp.eq.s32.totalorder %v38_v1, 0  ;;  %s104_s24 = sld [smem:[#allocation3 + $0x4]]  ;;  %vm43_vm1 = vcmp.eq.s32.totalorder %v38_v1, 1  ;;  %vm48_vm2 = vcmp.eq.s32.totalorder %v38_v1, 2  ;;  %vm53_vm3 = vcmp.eq.s32.totalorder %v38_v1, 3 }
  0x10   :  { %s105_s25 = sld [smem:[#allocation3 + $0x5]]  ;;  %vm58_vm4 = vcmp.eq.s32.totalorder %v38_v1, 4  ;;  %vm63_vm5 = vcmp.eq.s32.totalorder %v38_v1, 5  ;;  %vm68_vm6 = vcmp.eq.s32.totalorder %v38_v1, 6  ;;  %vm73_vm7 = vcmp.eq.s32.totalorder %v38_v1, 7 }
  0x11   :  { %v41_v2 = vstv %s40_s0  ;;  %s106_s2 = sld [smem:[#allocation3 + $0x6]] }
  0x12   :  { %v42_v3 = vsel %vm39_vm0, %v41_v2, 0  ;;  %v46_v4 = vstv %s101_s21  ;;  %s107_s26 = sld [smem:[#allocation3 + $0x7]] }
  0x13   :  { %v47_v5 = vsel %vm43_vm1, %v46_v4, %v42_v3  ;;  %v51_v6 = vstv %s102_s22 }
  0x14   :  { %v52_v7 = vsel %vm48_vm2, %v51_v6, %v47_v5  ;;  %v56_v8 = vstv %s103_s23 }
  0x15   :  { %v57_v9 = vsel %vm53_vm3, %v56_v8, %v52_v7  ;;  %v61_v10 = vstv %s104_s24 }
  0x16   :  { %v62_v12 = vsel %vm58_vm4, %v61_v10, %v57_v9  ;;  %v66_v13 = vstv %s105_s25 }
  0x17   :  { %v67_v14 = vsel %vm63_vm5, %v66_v13, %v62_v12  ;;  %v71_v15 = vstv %s106_s2 }
  0x18   :  { %v72_v16 = vsel %vm68_vm6, %v71_v15, %v67_v14  ;;  %v76_v17 = vstv %s107_s26 }
  0x19   :  { %v77_v20 = vsel %vm73_vm7, %v76_v17, %v72_v16 }
  0x1a   :  { %vm79_vm8 = vcmp.lt.s32.totalorder %v36_v11, %v77_v20 }
  0x1b   :  { %v82_v21 = vsel %vm79_vm8, %v80_v18, %v81_v19 }
  0x1c   :  { %83 = vst [vmem:[#allocation8] sm:$0xff] %v82_v21 }
  0x1d   :  { %94 = dma.vmem_to_hbm [thread:$0]  %s90_s28, 128, %s92_s4, [#allocation7]  }
  0x1e   :  { %175 = dma.done.wait [#allocation7], 128  }
  0x1f   :  { %176 = vsyncadd [#allocation7], 4294967168 }
  0x20   :  { %99 = vsyncpa [#allocation6], 1 }
  0x21   :  { %100 = vsyncpa [#allocation7], 1 }

</bundles_post_ra>
